<compile_context>
chip_gen: v5e
topology: v5e:2x2
jax: 0.10.0
libtpu: 0.0.40
codegen_flags: <defaults>
</compile_context>

<pallas_src>
import math
import functools

import jax
import jax.numpy as jnp
from jax import lax
from jax.experimental import pallas as pl
from jax.experimental.pallas import tpu as pltpu


def _mha_kernel(x_ref, wqkv_ref, bqkv_ref, convw_ref, convb_ref,
                cos_ref, sin_ref, rot_ref, wout_ref, bout_ref, out_ref,
                *, batch, seq, n_head, head_dim):
    B, S, H, D = batch, seq, n_head, head_dim
    BS = B * S
    E = H * D
    scale = 1.0 / math.sqrt(D)

    # ---- QKV projection on the pre-flattened (B*S, E) slab (bf16 x bf16 -> f32) ----
    x2 = x_ref[...]                                                     # (BS, E) bf16
    qkv = jnp.dot(x2, wqkv_ref[...], preferred_element_type=jnp.float32)
    qkv = qkv + bqkv_ref[...].astype(jnp.float32)                       # (BS, 3E) f32

    # ---- depthwise causal conv1d (k=3): y[s] = w0*x[s-2] + w1*x[s-1] + w2*x[s].
    # Rolls run over the flattened (BS, 3E) slab; rows that would leak across a
    # batch boundary are exactly the rows masked to zero (pos-in-sequence < shift).
    row = lax.broadcasted_iota(jnp.int32, (BS, 1), 0)
    m1 = row >= 1
    m2 = row >= 2
    for b in range(1, B):
        m1 = jnp.logical_and(m1, row != b * S)
        m2 = jnp.logical_and(m2, jnp.logical_and(row != b * S, row != b * S + 1))
    sh1 = jnp.where(jnp.broadcast_to(m1, qkv.shape),
                    pltpu.roll(qkv, shift=1, axis=0), 0.0)
    sh2 = jnp.where(jnp.broadcast_to(m2, qkv.shape),
                    pltpu.roll(qkv, shift=2, axis=0), 0.0)
    cw = convw_ref[...].astype(jnp.float32)                             # (3, 3E)
    y = (cw[0:1, :] * sh2 + cw[1:2, :] * sh1 + cw[2:3, :] * qkv
         + convb_ref[...].astype(jnp.float32))                          # (BS, 3E) f32

    q_all = y[:, 0:E]
    k_all = y[:, E:2 * E]
    v_all = y[:, 2 * E:3 * E]

    # ---- rotary embedding (non-interleaved, rotary_dim == head_dim) on q, k.
    # cos/sin tables arrive once as (S, E); tile across batch via sublane concat.
    cosf = jnp.concatenate([cos_ref[...].astype(jnp.float32)] * B, axis=0)   # (BS, E)
    sinf = jnp.concatenate([sin_ref[...].astype(jnp.float32)] * B, axis=0)
    rotm = rot_ref[...]                                                 # (E, E) bf16
    q_all = q_all * cosf + jnp.dot(q_all.astype(jnp.bfloat16), rotm,
                                   preferred_element_type=jnp.float32) * sinf
    k_all = k_all * cosf + jnp.dot(k_all.astype(jnp.bfloat16), rotm,
                                   preferred_element_type=jnp.float32) * sinf
    q_all = q_all * scale          # fold 1/sqrt(D) into q once

    # ---- restack (BS, H*D) -> head-batched (H*B, S, D) view (tile-aligned) ----
    def to_heads(xs):
        stk = jnp.concatenate([xs[:, h * D:(h + 1) * D] for h in range(H)], axis=0)
        return stk.reshape(H * B, S, D)          # split at sublane-tile boundary

    q3 = to_heads(q_all).astype(jnp.bfloat16)
    k3 = to_heads(k_all).astype(jnp.bfloat16)
    v3 = to_heads(v_all).astype(jnp.bfloat16)

    # ---- causal attention, batched over all B*H heads; deferred normalization ----
    qi = lax.broadcasted_iota(jnp.int32, (S, S), 0)
    ki = lax.broadcasted_iota(jnp.int32, (S, S), 1)
    causal = ki <= qi                                                  # (S, S)

    s = jnp.einsum('nqd,nkd->nqk', q3, k3,
                   preferred_element_type=jnp.float32)                 # (N, S, S) f32
    s = jnp.where(causal, s, -1e30)
    m = jnp.max(s, axis=-1, keepdims=True)
    p = jnp.exp(s - m)                                                  # unnormalized
    l = jnp.sum(p, axis=-1, keepdims=True)                              # (N, S, 1)
    ctx = jnp.einsum('nqk,nkd->nqd', p.astype(jnp.bfloat16), v3,
                     preferred_element_type=jnp.float32)                # (N, S, D) f32
    ctx = ctx * pl.reciprocal(l, approx=True)                           # defer softmax div

    # ---- back to (BS, E) token layout, single fused output projection ----
    ctx_flat = ctx.reshape(H * BS, D)
    ctx2 = jnp.concatenate([ctx_flat[h * BS:(h + 1) * BS, :] for h in range(H)],
                           axis=1)                                      # (BS, E) f32
    out = jnp.dot(ctx2.astype(jnp.bfloat16), wout_ref[...],
                  preferred_element_type=jnp.float32)
    out = out + bout_ref[...].astype(jnp.float32)                       # (BS, E) f32
    out_ref[...] = out.astype(out_ref.dtype)


def flash_mha_forward(x, params, *, n_head, head_dim, pos_emb=None, pos_dist_emb=None):
    """pos_emb / pos_dist_emb are accepted (as in the PyTorch forward) but unused."""
    B, S, E = x.shape
    x2 = x.reshape(B * S, E)        # wrapper-side fold: free layout plumbing
    kernel = functools.partial(_mha_kernel, batch=B, seq=S,
                               n_head=n_head, head_dim=head_dim)
    out2 = pl.pallas_call(
        kernel,
        out_shape=jax.ShapeDtypeStruct((B * S, E), x.dtype),
        grid_spec=pltpu.PrefetchScalarGridSpec(
            num_scalar_prefetch=0,
            grid=(1,),                                        # whole batch in one step
            in_specs=[
                pl.BlockSpec((B * S, E), lambda i: (0, 0)),        # x (flattened)
                pl.BlockSpec((E, 3 * E), lambda i: (0, 0)),        # Wqkv^T (bf16)
                pl.BlockSpec((1, 3 * E), lambda i: (0, 0)),        # b_qkv
                pl.BlockSpec((3, 3 * E), lambda i: (0, 0)),        # conv taps (3, 3E)
                pl.BlockSpec((1, 3 * E), lambda i: (0, 0)),        # conv bias
                pl.BlockSpec((S, E), lambda i: (0, 0)),            # cos (bf16, (S,E))
                pl.BlockSpec((S, E), lambda i: (0, 0)),            # sin (bf16, (S,E))
                pl.BlockSpec((E, E), lambda i: (0, 0)),            # rotate-half matrix
                pl.BlockSpec((E, E), lambda i: (0, 0)),            # Wout^T (bf16)
                pl.BlockSpec((1, E), lambda i: (0, 0)),            # b_out
            ],
            out_specs=pl.BlockSpec((B * S, E), lambda i: (0, 0)),
        ),
        compiler_params=pltpu.CompilerParams(
            dimension_semantics=("arbitrary",)),
    )(x2, params["wqkv_t"], params["bqkv"], params["convw"], params["convb"],
      params["cosE"], params["sinE"], params["rotm"], params["wout_t"], params["bout"])
    return out2.reshape(B, S, E)    # wrapper-side unfold


def init_params(key, S, E, H, D):
    ks = jax.random.split(key, 6)
    wqkv = 0.02 * jax.random.normal(ks[0], (3 * E, E), jnp.float32)    # torch (out, in)
    bqkv = 0.02 * jax.random.normal(ks[1], (3 * E,), jnp.float32)
    convw = 0.10 * jax.random.normal(ks[2], (3 * E, 1, 3), jnp.float32)  # torch Conv1d
    convb = 0.02 * jax.random.normal(ks[3], (3 * E,), jnp.float32)
    wout = 0.02 * jax.random.normal(ks[4], (E, E), jnp.float32)
    bout = 0.02 * jax.random.normal(ks[5], (E,), jnp.float32)

    # rotary tables (base=10000, non-interleaved), same for every head -> tile to E
    inv_freq = 1.0 / (10000.0 ** (jnp.arange(0, D, 2, dtype=jnp.float32) / D))
    t = jnp.arange(S, dtype=jnp.float32)
    freqs = jnp.outer(t, inv_freq)                                     # (S, D/2)
    cos_d = jnp.concatenate([jnp.cos(freqs), jnp.cos(freqs)], axis=-1)  # (S, D)
    sin_d = jnp.concatenate([jnp.sin(freqs), jnp.sin(freqs)], axis=-1)
    cosE = jnp.tile(cos_d, (1, H))                                     # (S, E)
    sinE = jnp.tile(sin_d, (1, H))

    # rotate_half as a matrix: out[:, j<half] = -x[:, j+half]; out[:, j>=half] = x[:, j-half]
    half = D // 2
    r = jnp.zeros((D, D), jnp.float32)
    r = r.at[half:, :half].set(-jnp.eye(half, dtype=jnp.float32))
    r = r.at[:half, half:].set(jnp.eye(half, dtype=jnp.float32))
    rotm = jax.scipy.linalg.block_diag(*([r] * H))                     # (E, E), entries 0/±1

    return dict(
        wqkv_t=wqkv.T.astype(jnp.bfloat16),
        bqkv=bqkv.reshape(1, 3 * E).astype(jnp.bfloat16),
        convw=convw[:, 0, :].T.astype(jnp.bfloat16),                   # (3, 3E)
        convb=convb.reshape(1, 3 * E).astype(jnp.bfloat16),
        wout_t=wout.T.astype(jnp.bfloat16),
        bout=bout.reshape(1, E).astype(jnp.bfloat16),
        cosE=cosE.astype(jnp.bfloat16),
        sinE=sinE.astype(jnp.bfloat16),
        rotm=rotm.astype(jnp.bfloat16),                                # exact in bf16
    )


def reference(x, p, H, D):
    """Pure-JAX reference of the same forward (f32 math on the bf16 params)."""
    xf = x.astype(jnp.float32)
    qkv = xf @ p["wqkv_t"].astype(jnp.float32) + p["bqkv"].astype(jnp.float32)
    B, S, C = qkv.shape
    E = C // 3
    pad = jnp.pad(qkv, ((0, 0), (2, 0), (0, 0)))
    cw = p["convw"].astype(jnp.float32)
    y = (cw[0] * pad[:, 0:S] + cw[1] * pad[:, 1:S + 1] + cw[2] * pad[:, 2:S + 2]
         + p["convb"].astype(jnp.float32))
    q, k, v = y[..., :E], y[..., E:2 * E], y[..., 2 * E:]
    cos = p["cosE"].astype(jnp.float32)
    sin = p["sinE"].astype(jnp.float32)
    rotm = p["rotm"].astype(jnp.float32)
    q = q * cos + (q @ rotm) * sin
    k = k * cos + (k @ rotm) * sin
    q = q.reshape(B, S, H, D); k = k.reshape(B, S, H, D); v = v.reshape(B, S, H, D)
    s = jnp.einsum("bqhd,bkhd->bhqk", q, k) / math.sqrt(D)
    mask = jnp.tril(jnp.ones((S, S), bool))
    s = jnp.where(mask, s, -1e30)
    pr = jax.nn.softmax(s, axis=-1)
    ctx = jnp.einsum("bhqk,bkhd->bqhd", pr, v).reshape(B, S, E)
    return ctx @ p["wout_t"].astype(jnp.float32) + p["bout"].astype(jnp.float32)


if __name__ == "__main__":
    # TransformerConfig: n_embed=32, n_head=4, head_size=8, causal=True, bf16.
    # TODO(synk): dropout is inference-mode (no-op); config.causal assumed True.
    B, S, E, H = 2, 8, 32, 4
    D = E // H

    key = jax.random.PRNGKey(0)
    kx, kp = jax.random.split(key)
    x = (0.5 * jax.random.normal(kx, (B, S, E), jnp.float32)).astype(jnp.bfloat16)
    params = init_params(kp, S, E, H, D)

    out = flash_mha_forward(x, params, n_head=H, head_dim=D)
    out = jax.block_until_ready(out)

    assert out.shape == (B, S, E) and out.dtype == jnp.bfloat16
    ref = reference(x, params, H, D)
    max_err = float(jnp.max(jnp.abs(out.astype(jnp.float32) - ref)))
    if max_err > 0.1:
        raise AssertionError(f"kernel/reference mismatch: max abs err {max_err}")
    print("KERNEL_OK")
</pallas_src>

<mosaic_0001>
module attributes {stable_mosaic.version = 11 : i64} {
  func.func @_mha_kernel(%arg0: i32, %arg1: memref<16x32xbf16, #tpu.memory_space<vmem>>, %arg2: memref<32x96xbf16, #tpu.memory_space<vmem>>, %arg3: memref<1x96xbf16, #tpu.memory_space<vmem>>, %arg4: memref<3x96xbf16, #tpu.memory_space<vmem>>, %arg5: memref<1x96xbf16, #tpu.memory_space<vmem>>, %arg6: memref<8x32xbf16, #tpu.memory_space<vmem>>, %arg7: memref<8x32xbf16, #tpu.memory_space<vmem>>, %arg8: memref<32x32xbf16, #tpu.memory_space<vmem>>, %arg9: memref<32x32xbf16, #tpu.memory_space<vmem>>, %arg10: memref<1x32xbf16, #tpu.memory_space<vmem>>, %arg11: memref<16x32xbf16, #tpu.memory_space<vmem>>) attributes {dimension_semantics = [#tpu.dimension_semantics<arbitrary>], iteration_bounds = array<i64: 1>, scalar_prefetch = 0 : i64, scratch_operands = 0 : i64, tpu.core_type = #tpu.core_type<tc>, window_params = [{pipeline_mode = #tpu.pipeline_mode<synchronous>, transform_indices = @transform_0, window_bounds = array<i64: 16, 32>}, {pipeline_mode = #tpu.pipeline_mode<synchronous>, transform_indices = @transform_1, window_bounds = array<i64: 32, 96>}, {pipeline_mode = #tpu.pipeline_mode<synchronous>, transform_indices = @transform_2, window_bounds = array<i64: 1, 96>}, {pipeline_mode = #tpu.pipeline_mode<synchronous>, transform_indices = @transform_3, window_bounds = array<i64: 3, 96>}, {pipeline_mode = #tpu.pipeline_mode<synchronous>, transform_indices = @transform_4, window_bounds = array<i64: 1, 96>}, {pipeline_mode = #tpu.pipeline_mode<synchronous>, transform_indices = @transform_5, window_bounds = array<i64: 8, 32>}, {pipeline_mode = #tpu.pipeline_mode<synchronous>, transform_indices = @transform_6, window_bounds = array<i64: 8, 32>}, {pipeline_mode = #tpu.pipeline_mode<synchronous>, transform_indices = @transform_7, window_bounds = array<i64: 32, 32>}, {pipeline_mode = #tpu.pipeline_mode<synchronous>, transform_indices = @transform_8, window_bounds = array<i64: 32, 32>}, {pipeline_mode = #tpu.pipeline_mode<synchronous>, transform_indices = @transform_9, window_bounds = array<i64: 1, 32>}, {pipeline_mode = #tpu.pipeline_mode<synchronous>, transform_indices = @transform_10, window_bounds = array<i64: 16, 32>}]} {
    %c0 = arith.constant 0 : index
    %c0_0 = arith.constant 0 : index
    %0 = vector.load %arg1[%c0, %c0_0] : memref<16x32xbf16, #tpu.memory_space<vmem>>, vector<16x32xbf16>
    %c0_1 = arith.constant 0 : index
    %c0_2 = arith.constant 0 : index
    %1 = vector.load %arg2[%c0_1, %c0_2] : memref<32x96xbf16, #tpu.memory_space<vmem>>, vector<32x96xbf16>
    %cst = arith.constant dense<0.000000e+00> : vector<16x96xf32>
    %2 = tpu.matmul %0, %1, %cst {dimension_numbers = #tpu.dot_dimension_numbers<[1], [0], [0], [1], [0, 0, 1, 1], [], []>} : vector<16x32xbf16>, vector<32x96xbf16>, vector<16x96xf32> -> vector<16x96xf32>
    %c0_3 = arith.constant 0 : index
    %c0_4 = arith.constant 0 : index
    %3 = vector.load %arg3[%c0_3, %c0_4] : memref<1x96xbf16, #tpu.memory_space<vmem>>, vector<1x96xbf16>
    %4 = arith.extf %3 : vector<1x96xbf16> to vector<1x96xf32>
    %5 = vector.broadcast %4 : vector<1x96xf32> to vector<16x96xf32>
    %6 = arith.addf %2, %5 : vector<16x96xf32>
    %7 = tpu.iota {dimensions = array<i32: 0>} : vector<16x1xi32>
    %c1_i32 = arith.constant 1 : i32
    %8 = vector.broadcast %c1_i32 : i32 to vector<16x1xi32>
    %9 = arith.cmpi sge, %7, %8 : vector<16x1xi32>
    %c2_i32 = arith.constant 2 : i32
    %10 = vector.broadcast %c2_i32 : i32 to vector<16x1xi32>
    %11 = arith.cmpi sge, %7, %10 : vector<16x1xi32>
    %c8_i32 = arith.constant 8 : i32
    %12 = vector.broadcast %c8_i32 : i32 to vector<16x1xi32>
    %13 = arith.cmpi ne, %7, %12 : vector<16x1xi32>
    %14 = arith.andi %9, %13 : vector<16x1xi1>
    %c8_i32_5 = arith.constant 8 : i32
    %15 = vector.broadcast %c8_i32_5 : i32 to vector<16x1xi32>
    %16 = arith.cmpi ne, %7, %15 : vector<16x1xi32>
    %c9_i32 = arith.constant 9 : i32
    %17 = vector.broadcast %c9_i32 : i32 to vector<16x1xi32>
    %18 = arith.cmpi ne, %7, %17 : vector<16x1xi32>
    %19 = arith.andi %16, %18 : vector<16x1xi1>
    %20 = arith.andi %11, %19 : vector<16x1xi1>
    %21 = vector.shape_cast %14 : vector<16x1xi1> to vector<16x1xi1>
    %22 = vector.broadcast %21 : vector<16x1xi1> to vector<16x96xi1>
    %c1_i32_6 = arith.constant 1 : i32
    %23 = tpu.dynamic_rotate %6 by %c1_i32_6 dim 0 : vector<16x96xf32>, i32 -> vector<16x96xf32>
    %cst_7 = arith.constant 0.000000e+00 : f32
    %24 = vector.broadcast %cst_7 : f32 to vector<16x96xf32>
    %25 = arith.select %22, %23, %24 : vector<16x96xi1>, vector<16x96xf32>
    %26 = vector.shape_cast %20 : vector<16x1xi1> to vector<16x1xi1>
    %27 = vector.broadcast %26 : vector<16x1xi1> to vector<16x96xi1>
    %c2_i32_8 = arith.constant 2 : i32
    %28 = tpu.dynamic_rotate %6 by %c2_i32_8 dim 0 : vector<16x96xf32>, i32 -> vector<16x96xf32>
    %cst_9 = arith.constant 0.000000e+00 : f32
    %29 = vector.broadcast %cst_9 : f32 to vector<16x96xf32>
    %30 = arith.select %27, %28, %29 : vector<16x96xi1>, vector<16x96xf32>
    %c0_10 = arith.constant 0 : index
    %c0_11 = arith.constant 0 : index
    %31 = vector.load %arg4[%c0_10, %c0_11] : memref<3x96xbf16, #tpu.memory_space<vmem>>, vector<3x96xbf16>
    %32 = arith.extf %31 : vector<3x96xbf16> to vector<3x96xf32>
    %33 = vector.extract_strided_slice %32 {offsets = [0, 0], sizes = [1, 96], strides = [1, 1]} : vector<3x96xf32> to vector<1x96xf32>
    %34 = vector.broadcast %33 : vector<1x96xf32> to vector<16x96xf32>
    %35 = arith.mulf %34, %30 : vector<16x96xf32>
    %36 = vector.extract_strided_slice %32 {offsets = [1, 0], sizes = [1, 96], strides = [1, 1]} : vector<3x96xf32> to vector<1x96xf32>
    %37 = vector.broadcast %36 : vector<1x96xf32> to vector<16x96xf32>
    %38 = arith.mulf %37, %25 : vector<16x96xf32>
    %39 = arith.addf %35, %38 : vector<16x96xf32>
    %40 = vector.extract_strided_slice %32 {offsets = [2, 0], sizes = [1, 96], strides = [1, 1]} : vector<3x96xf32> to vector<1x96xf32>
    %41 = vector.broadcast %40 : vector<1x96xf32> to vector<16x96xf32>
    %42 = arith.mulf %41, %6 : vector<16x96xf32>
    %43 = arith.addf %39, %42 : vector<16x96xf32>
    %c0_12 = arith.constant 0 : index
    %c0_13 = arith.constant 0 : index
    %44 = vector.load %arg5[%c0_12, %c0_13] : memref<1x96xbf16, #tpu.memory_space<vmem>>, vector<1x96xbf16>
    %45 = arith.extf %44 : vector<1x96xbf16> to vector<1x96xf32>
    %46 = vector.broadcast %45 : vector<1x96xf32> to vector<16x96xf32>
    %47 = arith.addf %43, %46 : vector<16x96xf32>
    %48 = vector.extract_strided_slice %47 {offsets = [0, 0], sizes = [16, 32], strides = [1, 1]} : vector<16x96xf32> to vector<16x32xf32>
    %49 = vector.extract_strided_slice %47 {offsets = [0, 32], sizes = [16, 32], strides = [1, 1]} : vector<16x96xf32> to vector<16x32xf32>
    %50 = vector.extract_strided_slice %47 {offsets = [0, 64], sizes = [16, 32], strides = [1, 1]} : vector<16x96xf32> to vector<16x32xf32>
    %c0_14 = arith.constant 0 : index
    %c0_15 = arith.constant 0 : index
    %51 = vector.load %arg6[%c0_14, %c0_15] : memref<8x32xbf16, #tpu.memory_space<vmem>>, vector<8x32xbf16>
    %52 = arith.extf %51 : vector<8x32xbf16> to vector<8x32xf32>
    %53 = tpu.concatenate %52, %52 in 0 : vector<8x32xf32>, vector<8x32xf32> -> vector<16x32xf32>
    %c0_16 = arith.constant 0 : index
    %c0_17 = arith.constant 0 : index
    %54 = vector.load %arg7[%c0_16, %c0_17] : memref<8x32xbf16, #tpu.memory_space<vmem>>, vector<8x32xbf16>
    %55 = arith.extf %54 : vector<8x32xbf16> to vector<8x32xf32>
    %56 = tpu.concatenate %55, %55 in 0 : vector<8x32xf32>, vector<8x32xf32> -> vector<16x32xf32>
    %c0_18 = arith.constant 0 : index
    %c0_19 = arith.constant 0 : index
    %57 = vector.load %arg8[%c0_18, %c0_19] : memref<32x32xbf16, #tpu.memory_space<vmem>>, vector<32x32xbf16>
    %58 = arith.mulf %48, %53 : vector<16x32xf32>
    %59 = arith.truncf %48 : vector<16x32xf32> to vector<16x32xbf16>
    %cst_20 = arith.constant dense<0.000000e+00> : vector<16x32xf32>
    %60 = tpu.matmul %59, %57, %cst_20 {dimension_numbers = #tpu.dot_dimension_numbers<[1], [0], [0], [1], [0, 0, 1, 1], [], []>} : vector<16x32xbf16>, vector<32x32xbf16>, vector<16x32xf32> -> vector<16x32xf32>
    %61 = arith.mulf %60, %56 : vector<16x32xf32>
    %62 = arith.addf %58, %61 : vector<16x32xf32>
    %63 = arith.mulf %49, %53 : vector<16x32xf32>
    %64 = arith.truncf %49 : vector<16x32xf32> to vector<16x32xbf16>
    %cst_21 = arith.constant dense<0.000000e+00> : vector<16x32xf32>
    %65 = tpu.matmul %64, %57, %cst_21 {dimension_numbers = #tpu.dot_dimension_numbers<[1], [0], [0], [1], [0, 0, 1, 1], [], []>} : vector<16x32xbf16>, vector<32x32xbf16>, vector<16x32xf32> -> vector<16x32xf32>
    %66 = arith.mulf %65, %56 : vector<16x32xf32>
    %67 = arith.addf %63, %66 : vector<16x32xf32>
    %cst_22 = arith.constant 0.353553385 : f32
    %68 = vector.broadcast %cst_22 : f32 to vector<16x32xf32>
    %69 = arith.mulf %62, %68 : vector<16x32xf32>
    %70 = vector.extract_strided_slice %69 {offsets = [0, 0], sizes = [16, 8], strides = [1, 1]} : vector<16x32xf32> to vector<16x8xf32>
    %71 = vector.extract_strided_slice %69 {offsets = [0, 8], sizes = [16, 8], strides = [1, 1]} : vector<16x32xf32> to vector<16x8xf32>
    %72 = vector.extract_strided_slice %69 {offsets = [0, 16], sizes = [16, 8], strides = [1, 1]} : vector<16x32xf32> to vector<16x8xf32>
    %73 = vector.extract_strided_slice %69 {offsets = [0, 24], sizes = [16, 8], strides = [1, 1]} : vector<16x32xf32> to vector<16x8xf32>
    %74 = tpu.concatenate %70, %71, %72, %73 in 0 : vector<16x8xf32>, vector<16x8xf32>, vector<16x8xf32>, vector<16x8xf32> -> vector<64x8xf32>
    %75 = vector.shape_cast %74 : vector<64x8xf32> to vector<8x8x8xf32>
    %76 = arith.truncf %75 : vector<8x8x8xf32> to vector<8x8x8xbf16>
    %77 = vector.extract_strided_slice %67 {offsets = [0, 0], sizes = [16, 8], strides = [1, 1]} : vector<16x32xf32> to vector<16x8xf32>
    %78 = vector.extract_strided_slice %67 {offsets = [0, 8], sizes = [16, 8], strides = [1, 1]} : vector<16x32xf32> to vector<16x8xf32>
    %79 = vector.extract_strided_slice %67 {offsets = [0, 16], sizes = [16, 8], strides = [1, 1]} : vector<16x32xf32> to vector<16x8xf32>
    %80 = vector.extract_strided_slice %67 {offsets = [0, 24], sizes = [16, 8], strides = [1, 1]} : vector<16x32xf32> to vector<16x8xf32>
    %81 = tpu.concatenate %77, %78, %79, %80 in 0 : vector<16x8xf32>, vector<16x8xf32>, vector<16x8xf32>, vector<16x8xf32> -> vector<64x8xf32>
    %82 = vector.shape_cast %81 : vector<64x8xf32> to vector<8x8x8xf32>
    %83 = arith.truncf %82 : vector<8x8x8xf32> to vector<8x8x8xbf16>
    %84 = vector.extract_strided_slice %50 {offsets = [0, 0], sizes = [16, 8], strides = [1, 1]} : vector<16x32xf32> to vector<16x8xf32>
    %85 = vector.extract_strided_slice %50 {offsets = [0, 8], sizes = [16, 8], strides = [1, 1]} : vector<16x32xf32> to vector<16x8xf32>
    %86 = vector.extract_strided_slice %50 {offsets = [0, 16], sizes = [16, 8], strides = [1, 1]} : vector<16x32xf32> to vector<16x8xf32>
    %87 = vector.extract_strided_slice %50 {offsets = [0, 24], sizes = [16, 8], strides = [1, 1]} : vector<16x32xf32> to vector<16x8xf32>
    %88 = tpu.concatenate %84, %85, %86, %87 in 0 : vector<16x8xf32>, vector<16x8xf32>, vector<16x8xf32>, vector<16x8xf32> -> vector<64x8xf32>
    %89 = vector.shape_cast %88 : vector<64x8xf32> to vector<8x8x8xf32>
    %90 = arith.truncf %89 : vector<8x8x8xf32> to vector<8x8x8xbf16>
    %91 = tpu.iota {dimensions = array<i32: 0>} : vector<8x8xi32>
    %92 = tpu.iota {dimensions = array<i32: 1>} : vector<8x8xi32>
    %93 = arith.cmpi sle, %92, %91 : vector<8x8xi32>
    "tpu.trace_start"() <{level = 10 : i32, message = "nqd,nkd->nqk"}> : () -> ()
    %cst_23 = arith.constant dense<0.000000e+00> : vector<8x8x8xf32>
    %94 = tpu.matmul %76, %83, %cst_23 {dimension_numbers = #tpu.dot_dimension_numbers<[2], [2], [1], [1], [0, 0, 0, 1, 1, 1], [0], [0]>} : vector<8x8x8xbf16>, vector<8x8x8xbf16>, vector<8x8x8xf32> -> vector<8x8x8xf32>
    %cst_24 = arith.constant -1.000000e+30 : f32
    "tpu.trace_stop"() : () -> ()
    %95 = vector.shape_cast %93 : vector<8x8xi1> to vector<1x8x8xi1>
    %96 = vector.broadcast %95 : vector<1x8x8xi1> to vector<8x8x8xi1>
    %97 = vector.broadcast %cst_24 : f32 to vector<8x8x8xf32>
    %98 = arith.select %96, %94, %97 : vector<8x8x8xi1>, vector<8x8x8xf32>
    %cst_25 = arith.constant dense<0xFF800000> : vector<8x8xf32>
    %99 = vector.multi_reduction <maximumf>, %98, %cst_25 [2] : vector<8x8x8xf32> to vector<8x8xf32>
    %100 = vector.shape_cast %99 : vector<8x8xf32> to vector<8x8x1xf32>
    %101 = vector.broadcast %100 : vector<8x8x1xf32> to vector<8x8x8xf32>
    %102 = arith.subf %98, %101 : vector<8x8x8xf32>
    %103 = math.exp %102 : vector<8x8x8xf32>
    %cst_26 = arith.constant dense<0.000000e+00> : vector<8x8xf32>
    %104 = vector.multi_reduction <add>, %103, %cst_26 [2] : vector<8x8x8xf32> to vector<8x8xf32>
    %105 = vector.shape_cast %104 : vector<8x8xf32> to vector<8x8x1xf32>
    %106 = arith.truncf %103 : vector<8x8x8xf32> to vector<8x8x8xbf16>
    "tpu.trace_start"() <{level = 10 : i32, message = "nqk,nkd->nqd"}> : () -> ()
    %cst_27 = arith.constant dense<0.000000e+00> : vector<8x8x8xf32>
    %107 = tpu.matmul %106, %90, %cst_27 {dimension_numbers = #tpu.dot_dimension_numbers<[2], [1], [1], [2], [0, 0, 0, 1, 1, 2], [0], [0]>} : vector<8x8x8xbf16>, vector<8x8x8xbf16>, vector<8x8x8xf32> -> vector<8x8x8xf32>
    "tpu.trace_stop"() : () -> ()
    %108 = tpu.reciprocal %105 {approx = true} : vector<8x8x1xf32> -> vector<8x8x1xf32>
    %109 = vector.broadcast %108 : vector<8x8x1xf32> to vector<8x8x8xf32>
    %110 = arith.mulf %107, %109 : vector<8x8x8xf32>
    %111 = vector.shape_cast %110 : vector<8x8x8xf32> to vector<64x8xf32>
    %112 = vector.extract_strided_slice %111 {offsets = [0, 0], sizes = [16, 8], strides = [1, 1]} : vector<64x8xf32> to vector<16x8xf32>
    %113 = vector.extract_strided_slice %111 {offsets = [16, 0], sizes = [16, 8], strides = [1, 1]} : vector<64x8xf32> to vector<16x8xf32>
    %114 = vector.extract_strided_slice %111 {offsets = [32, 0], sizes = [16, 8], strides = [1, 1]} : vector<64x8xf32> to vector<16x8xf32>
    %115 = vector.extract_strided_slice %111 {offsets = [48, 0], sizes = [16, 8], strides = [1, 1]} : vector<64x8xf32> to vector<16x8xf32>
    %116 = tpu.concatenate %112, %113, %114, %115 in 1 : vector<16x8xf32>, vector<16x8xf32>, vector<16x8xf32>, vector<16x8xf32> -> vector<16x32xf32>
    %117 = arith.truncf %116 : vector<16x32xf32> to vector<16x32xbf16>
    %c0_28 = arith.constant 0 : index
    %c0_29 = arith.constant 0 : index
    %118 = vector.load %arg9[%c0_28, %c0_29] : memref<32x32xbf16, #tpu.memory_space<vmem>>, vector<32x32xbf16>
    %cst_30 = arith.constant dense<0.000000e+00> : vector<16x32xf32>
    %119 = tpu.matmul %117, %118, %cst_30 {dimension_numbers = #tpu.dot_dimension_numbers<[1], [0], [0], [1], [0, 0, 1, 1], [], []>} : vector<16x32xbf16>, vector<32x32xbf16>, vector<16x32xf32> -> vector<16x32xf32>
    %c0_31 = arith.constant 0 : index
    %c0_32 = arith.constant 0 : index
    %120 = vector.load %arg10[%c0_31, %c0_32] : memref<1x32xbf16, #tpu.memory_space<vmem>>, vector<1x32xbf16>
    %121 = arith.extf %120 : vector<1x32xbf16> to vector<1x32xf32>
    %122 = vector.broadcast %121 : vector<1x32xf32> to vector<16x32xf32>
    %123 = arith.addf %119, %122 : vector<16x32xf32>
    %124 = arith.truncf %123 : vector<16x32xf32> to vector<16x32xbf16>
    %c0_33 = arith.constant 0 : index
    %c0_34 = arith.constant 0 : index
    %125 = vector.load %arg11[%c0_33, %c0_34] : memref<16x32xbf16, #tpu.memory_space<vmem>>, vector<16x32xbf16>
    tpu.vector_store %arg11[%c0_33, %c0_34], %124 {strides = array<i32>} : memref<16x32xbf16, #tpu.memory_space<vmem>>, vector<16x32xbf16>,
    return
  }
  func.func @transform_0(%arg0: i32) -> (i32, i32) {
    %c0_i32 = arith.constant 0 : i32
    %c0_i32_0 = arith.constant 0 : i32
    %c0_i32_1 = arith.constant 0 : i32
    return %c0_i32, %c0_i32_0 : i32, i32
  }
  func.func @transform_1(%arg0: i32) -> (i32, i32) {
    %c0_i32 = arith.constant 0 : i32
    %c0_i32_0 = arith.constant 0 : i32
    %c0_i32_1 = arith.constant 0 : i32
    return %c0_i32, %c0_i32_0 : i32, i32
  }
  func.func @transform_2(%arg0: i32) -> (i32, i32) {
    %c0_i32 = arith.constant 0 : i32
    %c0_i32_0 = arith.constant 0 : i32
    %c0_i32_1 = arith.constant 0 : i32
    return %c0_i32, %c0_i32_0 : i32, i32
  }
  func.func @transform_3(%arg0: i32) -> (i32, i32) {
    %c0_i32 = arith.constant 0 : i32
    %c0_i32_0 = arith.constant 0 : i32
    %c0_i32_1 = arith.constant 0 : i32
    return %c0_i32, %c0_i32_0 : i32, i32
  }
  func.func @transform_4(%arg0: i32) -> (i32, i32) {
    %c0_i32 = arith.constant 0 : i32
    %c0_i32_0 = arith.constant 0 : i32
    %c0_i32_1 = arith.constant 0 : i32
    return %c0_i32, %c0_i32_0 : i32, i32
  }
  func.func @transform_5(%arg0: i32) -> (i32, i32) {
    %c0_i32 = arith.constant 0 : i32
    %c0_i32_0 = arith.constant 0 : i32
    %c0_i32_1 = arith.constant 0 : i32
    return %c0_i32, %c0_i32_0 : i32, i32
  }
  func.func @transform_6(%arg0: i32) -> (i32, i32) {
    %c0_i32 = arith.constant 0 : i32
    %c0_i32_0 = arith.constant 0 : i32
    %c0_i32_1 = arith.constant 0 : i32
    return %c0_i32, %c0_i32_0 : i32, i32
  }
  func.func @transform_7(%arg0: i32) -> (i32, i32) {
    %c0_i32 = arith.constant 0 : i32
    %c0_i32_0 = arith.constant 0 : i32
    %c0_i32_1 = arith.constant 0 : i32
    return %c0_i32, %c0_i32_0 : i32, i32
  }
  func.func @transform_8(%arg0: i32) -> (i32, i32) {
    %c0_i32 = arith.constant 0 : i32
    %c0_i32_0 = arith.constant 0 : i32
    %c0_i32_1 = arith.constant 0 : i32
    return %c0_i32, %c0_i32_0 : i32, i32
  }
  func.func @transform_9(%arg0: i32) -> (i32, i32) {
    %c0_i32 = arith.constant 0 : i32
    %c0_i32_0 = arith.constant 0 : i32
    %c0_i32_1 = arith.constant 0 : i32
    return %c0_i32, %c0_i32_0 : i32, i32
  }
  func.func @transform_10(%arg0: i32) -> (i32, i32) {
    %c0_i32 = arith.constant 0 : i32
    %c0_i32_0 = arith.constant 0 : i32
    %c0_i32_1 = arith.constant 0 : i32
    return %c0_i32, %c0_i32_0 : i32, i32
  }
}

</mosaic_0001>

<bundles_post_ra>
// kernel: tpu_custom_call.1
= control target key start
LH: loop header
LB: loop body
LE: loop exit
PB: predicated region body
PF: predicated region fallthrough
CT: control target
= control target key end

     0   :  { %15 = vsyncpa [#allocation3], 0  ;;  %s1683_s0 = inlined_call_operand.hbm [shape: bf16[16,32], index: 0, kind: input, shape index: {}]   ;;  %s1684_s1 = inlined_call_operand.hbm [shape: bf16[32,96], index: 1, kind: input, shape index: {}]   ;;  %s1685_s2 = inlined_call_operand.hbm [shape: bf16[1,96], index: 2, kind: input, shape index: {}]   ;;  %s1686_s3 = inlined_call_operand.hbm [shape: bf16[3,96], index: 3, kind: input, shape index: {}]   ;;  %s1687_s4 = inlined_call_operand.hbm [shape: bf16[1,96], index: 4, kind: input, shape index: {}]   ;;  %s1688_s5 = inlined_call_operand.vmem [shape: bf16[8,32], index: 5, kind: input, shape index: {}]   ;;  %s1689_s6 = inlined_call_operand.hbm [shape: bf16[8,32], index: 6, kind: input, shape index: {}]   ;;  %s1690_s7 = inlined_call_operand.hbm [shape: bf16[32,32], index: 7, kind: input, shape index: {}]   ;;  %s1691_s8 = inlined_call_operand.hbm [shape: bf16[32,32], index: 8, kind: input, shape index: {}]   ;;  %s1692_s9 = inlined_call_operand.vmem [shape: bf16[1,32], index: 9, kind: input, shape index: {}]   ;;  %s1693_s10 = inlined_call_operand.hbm [shape: bf16[16,32], index: 10, kind: output, shape index: {}]  }
   0x1   :  { %16 = vsyncpa [#allocation6], 0 }
   0x2   :  { %17 = vsyncpa [#allocation9], 0 }
   0x3   :  { %18 = vsyncpa [#allocation12], 0 }
   0x4   :  { %19 = vsyncpa [#allocation15], 0 }
   0x5   :  { %20 = vsyncpa [#allocation4], 0  ;;  %s38_s15 = sshll.u32 %s1684_s1, 4  ;;  %s1381_s16 = smov [#allocation5]   ;;  %s39_s15 = int_to_ptr.hbm [resolvable:$true] %s38_s15 }
   0x6   :  { %s40_s17 = sshll.u32 %s1381_s16, 4  ;;  %s63_s20 = sshll.u32 %s1686_s3, 4  ;;  %s41_s17 = int_to_ptr.vmem [resolvable:$true] %s40_s17  ;;  %s64_s20 = int_to_ptr.hbm [resolvable:$true] %s63_s20 }
   0x7   :  { %s1382_s21 = smov 64   ;;  %s1383_s22 = smov 4  }
   0x8   :  { %46 = dma.hbm_to_vmem [thread:$0]  %s39_s15, 256, %s41_s17, [#allocation6], %s1382_s21, %s1382_s21, %s1383_s22  }
   0x9   :  { %s1384_s23 = smov [#allocation8]   ;;  %s87_s1 = sshll.u32 %s1689_s6, 4  ;;  %s88_s1 = int_to_ptr.hbm [resolvable:$true] %s87_s1 }
   0xa   :  { %s65_s24 = sshll.u32 %s1384_s23, 4  ;;  %s25_s3 = sshll.u32 %s1683_s0, 4  ;;  %s66_s24 = int_to_ptr.vmem [resolvable:$true] %s65_s24  ;;  %s26_s3 = int_to_ptr.hbm [resolvable:$true] %s25_s3 }
   0xb   :  { %68 = dma.hbm_to_vmem [thread:$0]  %s64_s20, 32, %s66_s24, [#allocation9]  }
   0xc   :  { %s1385_s29 = smov [#allocation11]   ;;  %s1386_s11 = smov [#allocation2]  }
   0xd   :  { %s89_s30 = sshll.u32 %s1385_s29, 4  ;;  %s27_s12 = sshll.u32 %s1386_s11, 4  ;;  %s90_s30 = int_to_ptr.vmem [resolvable:$true] %s89_s30  ;;  %s28_s12 = int_to_ptr.vmem [resolvable:$true] %s27_s12 }
   0xe   :  { %92 = dma.hbm_to_vmem [thread:$0]  %s88_s1, 64, %s90_s30, [#allocation12]  }
   0xf   :  { %s52_s15 = sshll.u32 %s1685_s2, 4  ;;  %s74_s0 = sshll.u32 %s1687_s4, 4  ;;  %s53_s15 = int_to_ptr.hbm [resolvable:$true] %s52_s15  ;;  %s75_s0 = int_to_ptr.hbm [resolvable:$true] %s74_s0 }
  0x10   :  { %33 = dma.hbm_to_vmem [thread:$0]  %s26_s3, 128, %s28_s12, [#allocation3], %s1382_s21, %s1382_s21, %s1383_s22  }
  0x11   :  { %s1387_s17 = smov [#allocation7]   ;;  %s1388_s19 = smov [#allocation10]  }
  0x12   :  { %s54_s18 = sshll.u32 %s1387_s17, 4  ;;  %s76_s20 = sshll.u32 %s1388_s19, 4  ;;  %s55_s18 = int_to_ptr.vmem [resolvable:$true] %s54_s18  ;;  %s77_s20 = int_to_ptr.vmem [resolvable:$true] %s76_s20 }
  0x13   :  { %57 = dma.hbm_to_vmem [thread:$0]  %s53_s15, 16, %s55_s18, [#allocation6]  }
  0x14   :  { %s97_s2 = sshll.u32 %s1690_s7, 4  ;;  %s110_s1 = sshll.u32 %s1691_s8, 4  ;;  %s98_s2 = int_to_ptr.hbm [resolvable:$true] %s97_s2  ;;  %s111_s1 = int_to_ptr.hbm [resolvable:$true] %s110_s1 }
  0x15   :  { %79 = dma.hbm_to_vmem [thread:$0]  %s75_s0, 16, %s77_s20, [#allocation9]  }
  0x16   :  { %s1389_s27 = smov [#allocation13]   ;;  %s1390_s28 = smov [#allocation14]  }
  0x17   :  { %s99_s4 = sshll.u32 %s1389_s27, 4  ;;  %s112_s3 = sshll.u32 %s1390_s28, 4  ;;  %s100_s4 = int_to_ptr.vmem [resolvable:$true] %s99_s4  ;;  %s113_s3 = int_to_ptr.vmem [resolvable:$true] %s112_s3 }
  0x18   :  { %105 = dma.hbm_to_vmem [thread:$0]  %s98_s2, 256, %s100_s4, [#allocation12], %s1382_s21, %s1382_s21, %s1383_s22  }
  0x19   :  { %118 = dma.hbm_to_vmem [thread:$0]  %s111_s1, 256, %s113_s3, [#allocation15], %s1382_s21, %s1382_s21, %s1383_s22  }
  0x1a   :  { %1369 = dma.done.wait [#allocation3], 128  }
  0x1b   :  { %1370 = vsyncadd [#allocation3], 4294967168 }
  0x1c   :  { %1371 = dma.done.wait [#allocation6], 272  }
  0x1d   :  { %1372 = vsyncadd [#allocation6], 4294967024 }
  0x1e   :  { %1373 = dma.done.wait [#allocation9], 48  }
  0x1f   :  { %1374 = vsyncadd [#allocation9], 4294967248 }
  0x20   :  { %1375 = dma.done.wait [#allocation12], 320  }
  0x21   :  { %1376 = vsyncadd [#allocation12], 4294966976 }
  0x22   :  { %1377 = dma.done.wait [#allocation15], 256  }
  0x23   :  { %1378 = vsyncadd [#allocation15], 4294967040  ;;  %v1067_v0 = vld [vmem:[#allocation5 + $0x8] sm:$0xff]  ;;  %v1066_v1 = vld [vmem:[#allocation5] sm:$0xff]  ;;  %vm180_vm0 = vcmask 261120   ;;  %v198_v6 = vlaneseq  ;;  %s1391_s7 = smov 96  }
  0x24   :  { %190 = vmatpush.bf16.msra.mxu0 %v1067_v0  ;;  %v1065_v2 = vld [vmem:[#allocation2] sm:$0xff]  ;;  %v1069_v3 = vld [vmem:[#allocation13 + $0x8] sm:$0xff]  ;;  %v160_v5 = vld [vmem:[#allocation7] sm:$0x1]  ;;  %s1392_s30 = smov 32   ;;  %s1394_s11 = smov 120  }
  0x25   :  { %289 = vmatpush.bf16.msra.mxu1 %v1069_v3  ;;  %319 = vmatpush.bf16.msra.mxu2 %v1069_v3  ;;  %v1068_v4 = vld [vmem:[#allocation13] sm:$0xff]  ;;  %v161_v7 = vunpack.c.l.bf16 %v160_v5  ;;  %v1493_v9 = vshrl.u32 %v198_v6, 7  ;;  %v237_v12 = vld [vmem:[#allocation8] sm:$0x3]  ;;  %v252_v17 = vld [vmem:[#allocation10] sm:$0x1] }
  0x26   :  { %v238_v14 = vunpack.c.l.bf16 %v237_v12  ;;  %v253_v25 = vunpack.c.l.bf16 %v252_v17  ;;  %v257_v48 = vld [vmem:[%s1688_s5] sm:$0xf]  ;;  %s1393_s5 = smov 104   ;;  %s1395_s12 = smov 112   ;;  %vm433_vm8 = vcmask 64512   ;;  %vm719_vm9 = vcmask 1043456  }
  0x27   :  { %v162_v10 = vperm.slane %v161_v7, 0  ;;  %v200_v11 = vadd.s32 8, %v1493_v9  ;;  %vm201_vm3 = vcmp.ge.s32.totalorder %v1493_v9, 1  ;;  %vm203_vm4 = vcmp.ge.s32.totalorder %v1493_v9, 2  ;;  %v259_v51 = vld [vmem:[#allocation11] sm:$0xf] }
  0x28   :  { %191 = vmatpush.bf16.msra.mxu0 %v1066_v1  ;;  %vm221_vm5 = vcmp.lt.s32.totalorder %v1493_v9, 1  ;;  %vm232_vm6 = vcmp.lt.s32.totalorder %v1493_v9, 2  ;;  %v239_v18 = vperm.slane %v238_v14, 0  ;;  %v242_v19 = vperm.slane %v238_v14, 1  ;;  %s1396_s13 = smov 16   ;;  %s1397_s14 = smov 8  }
  0x29   :  { %290 = vmatpush.bf16.msra.mxu1 %v1068_v4  ;;  %320 = vmatpush.bf16.msra.mxu2 %v1068_v4  ;;  %vm206_vm1 = vcmp.ne.s32.totalorder %v200_v11, 8  ;;  %vm210_vm2 = vcmp.ne.s32.totalorder %v200_v11, 9  ;;  %v247_v24 = vperm.slane %v238_v14, 2  ;;  %v254_v38 = vperm.slane %v253_v25, 0  ;;  %s1398_s15 = smov 24   ;;  %s1399_s0 = smov [#allocation16]  }
  0x2a   :  { %vm212_vm7 = vmand %vm206_vm1, %vm210_vm2  ;;  %v258_v49 = vunpack.c.l.bf16 %v257_v48  ;;  %v260_v52 = vunpack.c.l.bf16 %v259_v51  ;;  %vm946_vm11 = vcmask 130048   ;;  %vm949_vm12 = vcmask 195584   ;;  %s998_s17 = sshll.u32 %s1399_s0, 4  ;;  %s1000_s20 = sshll.u32 %s1693_s10, 4  ;;  %s999_s17 = int_to_ptr.vmem [resolvable:$true] %s998_s17  ;;  %s1001_s20 = int_to_ptr.hbm [resolvable:$true] %s1000_s20 }
  0x2b   :  { %1029 = vmatmul.msk.bf16.vlgmr.msra.gmra.mxu0 %vm180_vm0, %v1065_v2  ;;  %vm991_vm13 = vcmask 257024  }
  0xa8   :  { %v193_v8 = vpop.f32.mrf.mxu0 }
  0xa9   :  { %v194_v13 = vadd.f32 %v193_v8, %v162_v10 }
  0xab   :  { %v219_v20 = vrot.slane %v194_v13, 7  ;;  %v230_v21 = vrot.slane %v194_v13, 6  ;;  %v248_v39 = vmul.f32 %v247_v24, %v194_v13 }
  0xb0   :  { %v195_v15 = vpop.f32.mrf.mxu0 }
  0xb1   :  { %v196_v16 = vadd.f32 %v195_v15, %v162_v10 }
  0xb3   :  { %v220_v22 = vrot.slane %v196_v16, 7  ;;  %v231_v23 = vrot.slane %v196_v16, 6  ;;  %v249_v42 = vmul.f32 %v247_v24, %v196_v16 }
  0xb5   :  { %v222_v26 = vsel %vm221_vm5, %v219_v20, %v220_v22  ;;  %v223_v27 = vsel %vm221_vm5, %v220_v22, %v219_v20  ;;  %v233_v28 = vsel %vm232_vm6, %v230_v21, %v231_v23  ;;  %v234_v29 = vsel %vm232_vm6, %v231_v23, %v230_v21 }
  0xb6   :  { %v224_v30 = vsel %vm201_vm3, %v223_v27, 0.0  ;;  %v225_v31 = vsel %vm206_vm1, %v222_v26, 0.0  ;;  %v235_v32 = vsel %vm203_vm4, %v234_v29, 0.0  ;;  %v236_v33 = vsel %vm212_vm7, %v233_v28, 0.0 }
  0xb7   :  { %v240_v34 = vmul.f32 %v239_v18, %v235_v32  ;;  %v241_v35 = vmul.f32 %v239_v18, %v236_v33  ;;  %v243_v36 = vmul.f32 %v242_v19, %v224_v30  ;;  %v244_v37 = vmul.f32 %v242_v19, %v225_v31 }
  0xb9   :  { %v245_v40 = vadd.f32 %v243_v36, %v240_v34  ;;  %v246_v41 = vadd.f32 %v244_v37, %v241_v35 }
  0xbb   :  { %v250_v43 = vadd.f32 %v248_v39, %v245_v40  ;;  %v251_v44 = vadd.f32 %v249_v42, %v246_v41 }
  0xbd   :  { %v1506_v45 = vadd.f32 %v254_v38, %v250_v43  ;;  %v1508_v46 = vadd.f32 %v254_v38, %v251_v44 }
  0xbf   :  { %v267_v47 = vpack.c.bf16 %v1508_v46, %v1506_v45  ;;  %v265_v54 = vmul.f32 %v258_v49, %v1506_v45  ;;  %v266_v12 = vmul.f32 %v258_v49, %v1508_v46  ;;  %v1101_v41 = vpack.i.bf16 %v1506_v45, %v1508_v46 }
  0xc0   :  { %v418_v43 = vpack.c.bf16 %v1508_v46, %v1508_v46 }
  0xc1   :  { %308 = vrot.lane.b32.xlu0 %v267_v47, %s1391_s7  ;;  %1038 = vmatmul.msk.bf16.vlgmr.msra.gmra.mxu1 %vm180_vm0, %v267_v47 }
  0xc9   :  { %302 = vrot.lane.b32.xlu0 %v258_v49, %s1392_s30  ;;  %v737_v49 = vunpack.c.l.b16 %v418_v43 }
  0xcb   :  { %v738_v51 = vpack.c.b16 %v737_v49, %v737_v49 }
 0x133   :  { %v309_v50 = vpop.permute.xlu0 %308 }
 0x134   :  { %1039 = vmatmul.msk.bf16.vlgmr.msra.gmra.mxu2 %vm180_vm0, %v309_v50 }
 0x13b   :  { %v303_v61 = vpop.permute.xlu0 %302 }
 0x13c   :  { %v306_v62 = vmul.f32 %v303_v61, %v1508_v46  ;;  %v305_v1 = vmul.f32 %v303_v61, %v1506_v45 }
 0x13e   :  { %v292_v53 = vpop.f32.mrf.mxu1 }
 0x13f   :  { %v297_v55 = vmul.f32 %v292_v53, %v260_v52  ;;  %v1096_v53 = vpack.i.bf16 %v1508_v46, %v1506_v45 }
 0x141   :  { %v299_v56 = vadd.f32 %v297_v55, %v265_v54  ;;  %v417_v55 = vpack.c.bf16 %v1506_v45, %v1506_v45 }
 0x143   :  { %v339_v26 = vmul.f32 0.35355338, %v299_v56  ;;  %v712_v56 = vunpack.c.l.b16 %v417_v55 }
 0x145   :  { %v361_v42 = vpack.c.bf16 %v339_v26, %v339_v26 }
 0x146   :  { %v294_v7 = vpop.f32.mrf.mxu1 }
 0x147   :  { %v298_v11 = vmul.f32 %v294_v7, %v260_v52 }
 0x149   :  { %v300_v14 = vadd.f32 %v298_v11, %v266_v12 }
 0x14b   :  { %v340_v16 = vmul.f32 0.35355338, %v300_v14 }
 0x14d   :  { %v362_v54 = vpack.c.bf16 %v340_v16, %v340_v16 }
 0x1b7   :  { %v322_v57 = vpop.f32.mrf.mxu2 }
 0x1b8   :  { %v327_v60 = vmul.f32 %v322_v57, %v260_v52  ;;  %v713_v57 = vpack.c.b16 %v712_v56, %v712_v56 }
 0x1bf   :  { %v324_v58 = vpop.f32.mrf.mxu2 }
 0x1c0   :  { %v328_v59 = vmul.f32 %v324_v58, %v260_v52 }
 0x1c2   :  { %333 = vrot.lane.b32.xlu1 %v328_v59, %s1392_s30 }
 0x1ca   :  { %331 = vrot.lane.b32.xlu1 %v327_v60, %s1392_s30 }
 0x234   :  { %v334_v63 = vpop.permute.xlu1 %333 }
 0x235   :  { %v338_v0 = vadd.f32 %v334_v63, %v306_v62 }
 0x237   :  { %385 = vrot.lane.b32.xlu1 %v338_v0, %s1393_s5  ;;  %373 = vrot.lane.b32.xlu2 %v338_v0, %s1394_s11  ;;  %v390_v10 = vpack.c.bf16 %v338_v0, %v338_v0 }
 0x239   :  { %v454_v13 = vunpack.c.l.b16 %v390_v10 }
 0x23b   :  { %v455_v15 = vpack.c.b16 %v454_v13, %v454_v13 }
 0x23c   :  { %v332_v2 = vpop.permute.xlu1 %331 }
 0x23d   :  { %v337_v3 = vadd.f32 %v332_v2, %v305_v1 }
 0x23f   :  { %377 = vrot.lane.b32.xlu0 %v337_v3, %s1395_s12  ;;  %371 = vrot.lane.b32.xlu2 %v337_v3, %s1394_s11  ;;  %v389_v4 = vpack.c.bf16 %v337_v3, %v337_v3 }
 0x241   :  { %v429_v5 = vunpack.c.l.b16 %v389_v4 }
 0x243   :  { %v430_v8 = vpack.c.b16 %v429_v5, %v429_v5 }
 0x245   :  { %431 = vrot.lane.b32.xlu1 %v430_v8, %s1391_s7 }
 0x247   :  { %383 = vrot.lane.b32.xlu0 %v337_v3, %s1393_s5  ;;  %379 = vrot.lane.b32.xlu2 %v338_v0, %s1395_s12 }
 0x24d   :  { %456 = vrot.lane.b32.xlu1 %v455_v15, %s1391_s7 }
 0x24f   :  { %345 = vrot.lane.b32.xlu0 %v340_v16, %s1394_s11 }
 0x291   :  { %v374_v17 = vpop.permute.xlu2 %373 }
 0x292   :  { %v392_v18 = vpack.c.bf16 %v374_v17, %v374_v17 }
 0x294   :  { %v502_v19 = vunpack.c.l.b16 %v392_v18 }
 0x296   :  { %v503_v20 = vpack.c.b16 %v502_v19, %v502_v19 }
 0x298   :  { %504 = vrot.lane.b32.xlu2 %v503_v20, %s1391_s7 }
 0x299   :  { %v372_v21 = vpop.permute.xlu2 %371 }
 0x29a   :  { %v391_v22 = vpack.c.bf16 %v372_v21, %v372_v21 }
 0x29c   :  { %v478_v23 = vunpack.c.l.b16 %v391_v22 }
 0x29e   :  { %v479_v24 = vpack.c.b16 %v478_v23, %v478_v23 }
 0x2a0   :  { %480 = vrot.lane.b32.xlu2 %v479_v24, %s1391_s7 }
 0x2a1   :  { %v380_v25 = vpop.permute.xlu2 %379 }
 0x2a2   :  { %v394_v27 = vpack.c.bf16 %v380_v25, %v380_v25 }
 0x2a4   :  { %v550_v29 = vunpack.c.l.b16 %v394_v27  ;;  %v426_v27 = vand.u32 127, %v198_v6 }
 0x2a6   :  { %v551_v32 = vpack.c.b16 %v550_v29, %v550_v29  ;;  %vm1580_vm10 = vcmp.le.s32.totalorder %v426_v27, %v1493_v9 }
 0x2a8   :  { %343 = vrot.lane.b32.xlu2 %v339_v26, %s1394_s11 }
 0x2a9   :  { %v386_v28 = vpop.permute.xlu1 %385 }
 0x2aa   :  { %v396_v30 = vpack.c.bf16 %v386_v28, %v386_v28 }
 0x2ac   :  { %v598_v31 = vunpack.c.l.b16 %v396_v30 }
 0x2ae   :  { %v599_v33 = vpack.c.b16 %v598_v31, %v598_v31 }
 0x2b0   :  { %600 = vrot.lane.b32.xlu1 %v599_v33, %s1391_s7  ;;  %552 = vrot.lane.b32.xlu2 %v551_v32, %s1391_s7 }
 0x2b1   :  { %v378_v34 = vpop.permute.xlu0 %377 }
 0x2b2   :  { %v393_v35 = vpack.c.bf16 %v378_v34, %v378_v34 }
 0x2b4   :  { %v526_v36 = vunpack.c.l.b16 %v393_v35 }
 0x2b6   :  { %v527_v37 = vpack.c.b16 %v526_v36, %v526_v36 }
 0x2b7   :  { %v432_v38 = vpop.permute.xlu1 %431 }
 0x2b8   :  { %355 = vrot.lane.b32.xlu2 %v339_v26, %s1393_s5  ;;  %357 = vrot.lane.b32.xlu1 %v340_v16, %s1393_s5  ;;  %v438_v39 = vsel %vm433_vm8, %v432_v38, 0 }
 0x2b9   :  { %528 = vrot.lane.b32.xlu0 %v527_v37, %s1391_s7  ;;  %447 = vmatpush.bf16.xpose.msra.mxu3 %v438_v39  ;;  %v384_v40 = vpop.permute.xlu0 %383 }
 0x2ba   :  { %v395_v44 = vpack.c.bf16 %v384_v40, %v384_v40 }
 0x2bc   :  { %v574_v50 = vunpack.c.l.b16 %v395_v44 }
 0x2be   :  { %v575_v52 = vpack.c.b16 %v574_v50, %v574_v50 }
 0x2bf   :  { %v457_v47 = vpop.permute.xlu1 %456 }
 0x2c0   :  { %1102 = vrot.lane.b32.xlu2 %v1101_v41, %s1393_s5  ;;  %1040 = vmatmul.msk.bf16.vlgmr.msra.gmra.mxu3 %vm433_vm8, %v361_v42  ;;  %v462_v48 = vsel %vm433_vm8, %v457_v47, 0 }
 0x2c1   :  { %351 = vrot.lane.b32.xlu1 %v340_v16, %s1395_s12  ;;  %349 = vrot.lane.b32.xlu0 %v339_v26, %s1395_s12  ;;  %v346_v59 = vpop.permute.xlu0 %345 }
 0x2c2   :  { %471 = vmatpush.bf16.xpose.msrb.mxu0 %v462_v48  ;;  %v364_v60 = vpack.c.bf16 %v346_v59, %v346_v59 }
 0x2c8   :  { %739 = vrot.lane.b32.xlu2 %v738_v51, %s1382_s21 }
 0x2c9   :  { %1097 = vrot.lane.b32.xlu1 %v1096_v53, %s1395_s12  ;;  %576 = vrot.lane.b32.xlu0 %v575_v52, %s1391_s7 }
 0x2ca   :  { %1041 = vmatmul.msk.bf16.vlgmr.msrb.gmra.mxu0 %vm433_vm8, %v362_v54 }
 0x2d1   :  { %1092 = vrot.lane.b32.xlu0 %v1101_v41, %s1394_s11 }
 0x2d9   :  { %714 = vrot.lane.b32.xlu0 %v713_v57, %s1382_s21 }
 0x2f2   :  { %v505_v58 = vpop.permute.xlu2 %504 }
 0x2f3   :  { %v510_v46 = vsel %vm433_vm8, %v505_v58, 0 }
 0x2f4   :  { %519 = vmatpush.bf16.xpose.msrb.mxu2 %v510_v46 }
 0x2fa   :  { %v481_v61 = vpop.permute.xlu2 %480 }
 0x2fb   :  { %1043 = vmatmul.msk.bf16.vlgmr.msrb.gmra.mxu2 %vm433_vm8, %v364_v60  ;;  %v486_v62 = vsel %vm433_vm8, %v481_v61, 0 }
 0x2fc   :  { %495 = vmatpush.bf16.xpose.msrb.mxu1 %v486_v62 }
 0x302   :  { %v344_v63 = vpop.permute.xlu2 %343 }
 0x303   :  { %v363_v45 = vpack.c.bf16 %v344_v63, %v344_v63 }
 0x305   :  { %1042 = vmatmul.msk.bf16.vlgmr.msrb.gmra.mxu1 %vm433_vm8, %v363_v45 }
 0x30a   :  { %v553_v0 = vpop.permute.xlu2 %552 }
 0x30b   :  { %v558_v1 = vsel %vm433_vm8, %v553_v0, 0 }
 0x30c   :  { %567 = vmatpush.bf16.xpose.msra.mxu0 %v558_v1 }
 0x312   :  { %v356_v2 = vpop.permute.xlu2 %355 }
 0x313   :  { %v367_v24 = vpack.c.bf16 %v356_v2, %v356_v2 }
 0x31a   :  { %v1564_v3 = vpop.permute.xlu2 %1102 }
 0x31b   :  { %v1105_v61 = vunpack.i.h.bf16 %v1564_v3 }
 0x31d   :  { %v423_v2 = vpack.c.bf16 %v1105_v61, %v1105_v61 }
 0x322   :  { %v601_v4 = vpop.permute.xlu1 %600  ;;  %v740_v5 = vpop.permute.xlu2 %739 }
 0x323   :  { %v606_v7 = vsel %vm433_vm8, %v601_v4, 0  ;;  %v745_v8 = vsel %vm719_vm9, %v740_v5, 0 }
 0x324   :  { %615 = vmatpush.bf16.xpose.msra.mxu2 %v606_v7  ;;  %754 = vmatpush.bf16.msrb.mxu0 %v745_v8 }
 0x32a   :  { %v358_v10 = vpop.permute.xlu1 %357 }
 0x32b   :  { %v368_v11 = vpack.c.bf16 %v358_v10, %v358_v10  ;;  %v529_v12 = vpop.permute.xlu0 %528 }
 0x32c   :  { %v534_v13 = vsel %vm433_vm8, %v529_v12, 0 }
 0x32d   :  { %543 = vmatpush.bf16.xpose.msrb.mxu3 %v534_v13  ;;  %1047 = vmatmul.msk.bf16.vlgmr.msra.gmra.mxu2 %vm433_vm8, %v368_v11 }
 0x333   :  { %v352_v14 = vpop.permute.xlu1 %351  ;;  %v350_v15 = vpop.permute.xlu0 %349 }
 0x334   :  { %v366_v16 = vpack.c.bf16 %v352_v14, %v352_v14  ;;  %v365_v17 = vpack.c.bf16 %v350_v15, %v350_v15  ;;  %v857_v14 = vunpack.c.l.b16 %v423_v2 }
 0x336   :  { %1044 = vmatmul.msk.bf16.vlgmr.msrb.gmra.mxu3 %vm433_vm8, %v365_v17  ;;  %1045 = vmatmul.msk.bf16.vlgmr.msra.gmra.mxu0 %vm433_vm8, %v366_v16  ;;  %v858_v17 = vpack.c.b16 %v857_v14, %v857_v14 }
 0x33b   :  { %v1572_v18 = vpop.permute.xlu1 %1097  ;;  %v577_v19 = vpop.permute.xlu0 %576 }
 0x33c   :  { %v1099_v20 = vunpack.i.l.bf16 %v1572_v18  ;;  %v582_v21 = vsel %vm433_vm8, %v577_v19, 0 }
 0x33d   :  { %591 = vmatpush.bf16.xpose.msra.mxu1 %v582_v21 }
 0x33e   :  { %v421_v22 = vpack.c.bf16 %v1099_v20, %v1099_v20 }
 0x340   :  { %v809_v23 = vunpack.c.l.b16 %v421_v22  ;;  %v1104_v22 = vunpack.i.l.bf16 %v1564_v3 }
 0x342   :  { %v810_v25 = vpack.c.b16 %v809_v23, %v809_v23 }
 0x343   :  { %v1093_v26 = vpop.permute.xlu0 %1092  ;;  %v449_v28 = vpop.f32.mrf.mxu3 }
 0x344   :  { %v1094_v29 = vunpack.i.l.bf16 %v1093_v26  ;;  %811 = vrot.lane.b32.xlu0 %v810_v25, %s1382_s21  ;;  %1046 = vmatmul.msk.bf16.vlgmr.msra.gmra.mxu1 %vm433_vm8, %v367_v24  ;;  %v1095_v30 = vunpack.i.h.bf16 %v1093_v26  ;;  %v1592_v43 = vsel %vm1580_vm10, %v449_v28, -1e+30  ;;  %v424_v25 = vpack.c.bf16 %v1104_v22, %v1104_v22 }
 0x345   :  { %v631_v44 = vsel %vm433_vm8, %v1592_v43, -inf  ;;  %v1100_v26 = vunpack.i.h.bf16 %v1572_v18 }
 0x346   :  { %v420_v31 = vpack.c.bf16 %v1094_v29, %v1094_v29  ;;  %v419_v36 = vpack.c.bf16 %v1095_v30, %v1095_v30  ;;  %v881_v27 = vunpack.c.l.b16 %v424_v25 }
 0x347   :  { %v473_v33 = vpop.f32.mrf.mxu0  ;;  %v422_v28 = vpack.c.bf16 %v1100_v26, %v1100_v26 }
 0x348   :  { %v624_v34 = vsel %vm1580_vm10, %v473_v33, -1e+30  ;;  %v785_v35 = vunpack.c.l.b16 %v420_v31  ;;  %v761_v9 = vunpack.c.l.b16 %v419_v36  ;;  %v882_v29 = vpack.c.b16 %v881_v27, %v881_v27 }
 0x349   :  { %v634_v6 = vsel %vm433_vm8, %v624_v34, -inf  ;;  %v833_v30 = vunpack.c.l.b16 %v422_v28 }
 0x34a   :  { %635 = vmax.xlane.f32.xlu2 %v634_v6  ;;  %v786_v37 = vpack.c.b16 %v785_v35, %v785_v35  ;;  %v762_v42 = vpack.c.b16 %v761_v9, %v761_v9 }
 0x34b   :  { %v715_v38 = vpop.permute.xlu0 %714  ;;  %v451_v39 = vpop.f32.mrf.mxu3  ;;  %v834_v31 = vpack.c.b16 %v833_v30, %v833_v30 }
 0x34c   :  { %v721_v40 = vsel %vm719_vm9, %v715_v38, 0  ;;  %787 = vrot.lane.b32.xlu1 %v786_v37, %s1382_s21 }
 0x34d   :  { %730 = vmatpush.bf16.msra.mxu3 %v721_v40 }
 0x34f   :  { %v475_v41 = vpop.f32.mrf.mxu0 }
 0x354   :  { %763 = vrot.lane.b32.xlu1 %v762_v42, %s1382_s21 }
 0x36e   :  { %632 = vmax.xlane.f32.xlu0 %v631_v44 }
 0x37e   :  { %v521_v47 = vpop.f32.mrf.mxu2 }
 0x37f   :  { %v1618_v63 = vsel %vm1580_vm10, %v521_v47, -1e+30 }
 0x380   :  { %v640_v5 = vsel %vm433_vm8, %v1618_v63, -inf }
 0x382   :  { %v497_v48 = vpop.f32.mrf.mxu1 }
 0x383   :  { %v1598_v49 = vsel %vm1580_vm10, %v497_v48, -1e+30 }
 0x384   :  { %v637_v50 = vsel %vm433_vm8, %v1598_v49, -inf }
 0x385   :  { %638 = vmax.xlane.f32.xlu2 %v637_v50 }
 0x386   :  { %v523_v51 = vpop.f32.mrf.mxu2 }
 0x38a   :  { %v499_v52 = vpop.f32.mrf.mxu1 }
 0x3b0   :  { %v617_v53 = vpop.f32.mrf.mxu2 }
 0x3b1   :  { %v1604_v54 = vsel %vm1580_vm10, %v617_v53, -1e+30 }
 0x3b2   :  { %v652_v55 = vsel %vm433_vm8, %v1604_v54, -inf }
 0x3b3   :  { %v569_v56 = vpop.f32.mrf.mxu0  ;;  %653 = vmax.xlane.f32.xlu0 %v652_v55 }
 0x3b4   :  { %v1610_v57 = vsel %vm1580_vm10, %v569_v56, -1e+30 }
 0x3b5   :  { %v646_v58 = vsel %vm433_vm8, %v1610_v57, -inf }
 0x3b6   :  { %v812_v46 = vpop.permute.xlu0 %811  ;;  %647 = vmax.xlane.f32.xlu1 %v646_v58 }
 0x3b7   :  { %v817_v59 = vsel %vm719_vm9, %v812_v46, 0 }
 0x3b8   :  { %826 = vmatpush.bf16.msrb.mxu3 %v817_v59  ;;  %v619_v60 = vpop.f32.mrf.mxu2 }
 0x3b9   :  { %v545_v62 = vpop.f32.mrf.mxu3 }
 0x3ba   :  { %v1622_v45 = vsel %vm1580_vm10, %v545_v62, -1e+30 }
 0x3bb   :  { %v571_v0 = vpop.f32.mrf.mxu0  ;;  %v643_v1 = vsel %vm433_vm8, %v1622_v45, -inf }
 0x3bc   :  { %644 = vmax.xlane.f32.xlu2 %v643_v1 }
 0x3bd   :  { %v636_v4 = vpop.xlane.xlu2 %635 }
 0x3be   :  { %v656_v7 = vsub.f32 %v624_v34, %v636_v4  ;;  %v788_v8 = vpop.permute.xlu1 %787  ;;  %641 = vmax.xlane.f32.xlu1 %v640_v5 }
 0x3bf   :  { %v793_v10 = vsel %vm719_vm9, %v788_v8, 0 }
 0x3c0   :  { %v665_v11 = vmul.f32 1.442695, %v656_v7  ;;  %802 = vmatpush.bf16.msrb.mxu2 %v793_v10 }
 0x3c1   :  { %v547_v12 = vpop.f32.mrf.mxu3  ;;  %v593_v13 = vpop.f32.mrf.mxu1 }
 0x3c2   :  { %1121 = vpow2.f32 %v665_v11  ;;  %v629_v15 = vsel %vm1580_vm10, %v593_v13, -1e+30 }
 0x3c3   :  { %v649_v16 = vsel %vm433_vm8, %v629_v15, -inf }
 0x3c4   :  { %650 = vmax.xlane.f32.xlu2 %v649_v16 }
 0x3c6   :  { %v764_v19 = vpop.permute.xlu1 %763 }
 0x3c7   :  { %v769_v20 = vsel %vm719_vm9, %v764_v19, 0  ;;  %859 = vrot.lane.b32.xlu0 %v858_v17, %s1382_s21 }
 0x3c8   :  { %v1634_v21 = vpop.eup %1121  ;;  %778 = vmatpush.bf16.msrb.mxu1 %v769_v20 }
 0x3c9   :  { %v704_v23 = vpack.c.bf16 %v1634_v21, %v1634_v21  ;;  %v595_v24 = vpop.f32.mrf.mxu1 }
 0x3cb   :  { %1049 = vmatmul.msk.bf16.vlgmr.msrb.gmra.mxu0 %vm433_vm8, %v704_v23 }
 0x3d7   :  { %883 = vrot.lane.b32.xlu1 %v882_v29, %s1382_s21 }
 0x3dc   :  { %835 = vrot.lane.b32.xlu2 %v834_v31, %s1382_s21 }
 0x3e1   :  { %v633_v32 = vpop.xlane.xlu0 %632 }
 0x3e2   :  { %v655_v3 = vsub.f32 %v1592_v43, %v633_v32 }
 0x3e4   :  { %v663_v33 = vmul.f32 1.442695, %v655_v3 }
 0x3e6   :  { %1123 = vpow2.f32 %v663_v33 }
 0x3ec   :  { %v1124_v34 = vpop.eup %1123 }
 0x3ed   :  { %v703_v35 = vpack.c.bf16 %v1124_v34, %v1124_v34  ;;  %v679_v8 = vsel %vm433_vm8, %v1124_v34, 0.0 }
 0x3ef   :  { %1048 = vmatmul.msk.bf16.vlgmr.msra.gmra.mxu3 %vm433_vm8, %v703_v35 }
 0x3f8   :  { %v639_v6 = vpop.xlane.xlu2 %638 }
 0x3f9   :  { %v657_v18 = vsub.f32 %v1598_v49, %v639_v6 }
 0x3fb   :  { %v667_v36 = vmul.f32 1.442695, %v657_v18 }
 0x3fd   :  { %1125 = vpow2.f32 %v667_v36 }
 0x403   :  { %v1126_v37 = vpop.eup %1125 }
 0x404   :  { %v705_v38 = vpack.c.bf16 %v1126_v37, %v1126_v37  ;;  %v685_v39 = vsel %vm433_vm8, %v1126_v37, 0.0 }
 0x405   :  { %686 = vadd.xlane.f32.xlu0 %v685_v39 }
 0x406   :  { %1050 = vmatmul.msk.bf16.vlgmr.msrb.gmra.mxu1 %vm433_vm8, %v705_v38 }
 0x426   :  { %v654_v43 = vpop.xlane.xlu0 %653 }
 0x427   :  { %v662_v50 = vsub.f32 %v1604_v54, %v654_v43 }
 0x429   :  { %v648_v40 = vpop.xlane.xlu1 %647  ;;  %v677_v55 = vmul.f32 1.442695, %v662_v50 }
 0x42a   :  { %v660_v9 = vsub.f32 %v1610_v57, %v648_v40 }
 0x42c   :  { %v673_v41 = vmul.f32 1.442695, %v660_v9 }
 0x42e   :  { %1127 = vpow2.f32 %v673_v41 }
 0x42f   :  { %v645_v42 = vpop.xlane.xlu2 %644 }
 0x430   :  { %v659_v44 = vsub.f32 %v1622_v45, %v645_v42 }
 0x431   :  { %v642_v47 = vpop.xlane.xlu1 %641 }
 0x432   :  { %v671_v48 = vmul.f32 1.442695, %v659_v44  ;;  %v658_v49 = vsub.f32 %v1618_v63, %v642_v47 }
 0x434   :  { %v1128_v51 = vpop.eup %1127  ;;  %1129 = vpow2.f32 %v671_v48  ;;  %v669_v52 = vmul.f32 1.442695, %v658_v49 }
 0x435   :  { %v694_v53 = vsel %vm433_vm8, %v1128_v51, 0.0  ;;  %v708_v5 = vpack.c.bf16 %v1128_v51, %v1128_v51 }
 0x436   :  { %1131 = vpow2.f32 %v669_v52  ;;  %695 = vadd.xlane.f32.xlu0 %v694_v53  ;;  %v1071_v52 = vld [vmem:[#allocation14 + $0x8] sm:$0xff]  ;;  %v1070_v53 = vld [vmem:[#allocation14] sm:$0xff] }
 0x437   :  { %v651_v56 = vpop.xlane.xlu2 %650  ;;  %1133 = vpow2.f32 %v677_v55  ;;  %981 = vmatpush.bf16.msra.mxu3 %v1071_v52 }
 0x438   :  { %v661_v57 = vsub.f32 %v629_v15, %v651_v56  ;;  %v682_v15 = vsel %vm433_vm8, %v1634_v21, 0.0 }
 0x439   :  { %v860_v58 = vpop.permute.xlu0 %859 }
 0x43a   :  { %v1130_v46 = vpop.eup %1129  ;;  %v675_v59 = vmul.f32 1.442695, %v661_v57  ;;  %v865_v60 = vsel %vm719_vm9, %v860_v58, 0 }
 0x43b   :  { %v707_v61 = vpack.c.bf16 %v1130_v46, %v1130_v46  ;;  %874 = vmatpush.bf16.msra.mxu1 %v865_v60  ;;  %v691_v54 = vsel %vm433_vm8, %v1130_v46, 0.0  ;;  %982 = vmatpush.bf16.msra.mxu3 %v1070_v53 }
 0x43c   :  { %v1132_v62 = vpop.eup %1131  ;;  %1135 = vpow2.f32 %v675_v59  ;;  %692 = vadd.xlane.f32.xlu2 %v691_v54 }
 0x43d   :  { %v706_v63 = vpack.c.bf16 %v1132_v62, %v1132_v62  ;;  %1052 = vmatmul.msk.bf16.vlgmr.msrb.gmra.mxu3 %vm433_vm8, %v707_v61  ;;  %v688_v45 = vsel %vm433_vm8, %v1132_v62, 0.0  ;;  %v1134_v2 = vpop.eup %1133 }
 0x43e   :  { %689 = vadd.xlane.f32.xlu1 %v688_v45  ;;  %v700_v11 = vsel %vm433_vm8, %v1134_v2, 0.0  ;;  %v710_v16 = vpack.c.bf16 %v1134_v2, %v1134_v2 }
 0x43f   :  { %v836_v0 = vpop.permute.xlu2 %835  ;;  %1051 = vmatmul.msk.bf16.vlgmr.msrb.gmra.mxu2 %vm433_vm8, %v706_v63 }
 0x440   :  { %v841_v1 = vsel %vm719_vm9, %v836_v0, 0 }
 0x441   :  { %850 = vmatpush.bf16.msra.mxu0 %v841_v1 }
 0x442   :  { %v1136_v4 = vpop.eup %1135 }
 0x443   :  { %v709_v7 = vpack.c.bf16 %v1136_v4, %v1136_v4  ;;  %v697_v10 = vsel %vm433_vm8, %v1136_v4, 0.0 }
 0x444   :  { %680 = vadd.xlane.f32.xlu2 %v679_v8  ;;  %1053 = vmatmul.msk.bf16.vlgmr.msra.gmra.mxu0 %vm433_vm8, %v708_v5 }
 0x445   :  { %698 = vadd.xlane.f32.xlu0 %v697_v10  ;;  %1054 = vmatmul.msk.bf16.vlgmr.msra.gmra.mxu1 %vm433_vm8, %v709_v7 }
 0x446   :  { %701 = vadd.xlane.f32.xlu1 %v700_v11 }
 0x448   :  { %v1664_v12 = vpop.f32.mrf.mxu0 }
 0x449   :  { %v884_v13 = vpop.permute.xlu1 %883 }
 0x44a   :  { %v889_v14 = vsel %vm719_vm9, %v884_v13, 0 }
 0x44b   :  { %898 = vmatpush.bf16.msra.mxu2 %v889_v14 }
 0x44d   :  { %683 = vadd.xlane.f32.xlu0 %v682_v15 }
 0x44f   :  { %1055 = vmatmul.msk.bf16.vlgmr.msra.gmra.mxu2 %vm433_vm8, %v710_v16 }
 0x450   :  { %v758_v17 = vpop.f32.mrf.mxu0 }
 0x472   :  { %v732_v19 = vpop.f32.mrf.mxu3 }
 0x478   :  { %v687_v24 = vpop.xlane.xlu0 %686 }
 0x479   :  { %1137 = vrcp.f32 %v687_v24 }
 0x47a   :  { %v734_v20 = vpop.f32.mrf.mxu3 }
 0x47f   :  { %v1138_v28 = vpop.eup %1137 }
 0x483   :  { %v780_v22 = vpop.f32.mrf.mxu1 }
 0x484   :  { %v914_v6 = vmul.f32 %v1138_v28, %v780_v22 }
 0x48b   :  { %v782_v23 = vpop.f32.mrf.mxu1 }
 0x4a9   :  { %v696_v26 = vpop.xlane.xlu0 %695 }
 0x4af   :  { %v693_v25 = vpop.xlane.xlu2 %692 }
 0x4b0   :  { %1139 = vrcp.f32 %v693_v25 }
 0x4b1   :  { %v690_v27 = vpop.xlane.xlu1 %689  ;;  %1141 = vrcp.f32 %v696_v26 }
 0x4b2   :  { %1143 = vrcp.f32 %v690_v27 }
 0x4b6   :  { %v1140_v29 = vpop.eup %1139 }
 0x4b7   :  { %v1142_v30 = vpop.eup %1141  ;;  %v681_v55 = vpop.xlane.xlu2 %680 }
 0x4b8   :  { %v1144_v3 = vpop.eup %1143  ;;  %v699_v38 = vpop.xlane.xlu0 %698 }
 0x4b9   :  { %v702_v40 = vpop.xlane.xlu1 %701  ;;  %1145 = vrcp.f32 %v699_v38 }
 0x4ba   :  { %1147 = vrcp.f32 %v702_v40 }
 0x4bb   :  { %1149 = vrcp.f32 %v681_v55 }
 0x4bf   :  { %v1146_v43 = vpop.eup %1145 }
 0x4c0   :  { %v828_v21 = vpop.f32.mrf.mxu3  ;;  %v1148_v44 = vpop.eup %1147 }
 0x4c1   :  { %v916_v31 = vmul.f32 %v1140_v29, %v828_v21  ;;  %v852_v32 = vpop.f32.mrf.mxu0  ;;  %v684_v56 = vpop.xlane.xlu0 %683 }
 0x4c2   :  { %v917_v33 = vmul.f32 %v1142_v30, %v852_v32  ;;  %v804_v34 = vpop.f32.mrf.mxu2  ;;  %v876_v35 = vpop.f32.mrf.mxu1  ;;  %1151 = vrcp.f32 %v684_v56 }
 0x4c3   :  { %v915_v18 = vmul.f32 %v1144_v3, %v804_v34  ;;  %v918_v48 = vmul.f32 %v1146_v43, %v876_v35  ;;  %v1150_v58 = vpop.eup %1149 }
 0x4c4   :  { %v1111_v36 = vpack.i.bf16 %v917_v33, %v916_v31  ;;  %v912_v61 = vmul.f32 %v1150_v58, %v732_v19 }
 0x4c5   :  { %v1106_v37 = vpack.i.bf16 %v915_v18, %v914_v6 }
 0x4c6   :  { %1112 = vrot.lane.b32.xlu2 %v1111_v36, %s1396_s13 }
 0x4c7   :  { %1107 = vrot.lane.b32.xlu1 %v1106_v37, %s1397_s14 }
 0x4c8   :  { %v830_v39 = vpop.f32.mrf.mxu3  ;;  %v1152_v46 = vpop.eup %1151 }
 0x4c9   :  { %v854_v9 = vpop.f32.mrf.mxu0  ;;  %v913_v54 = vmul.f32 %v1152_v46, %v1664_v12  ;;  %v957_v12 = vld [vmem:[%s1692_s9] sm:$0x1] }
 0x4ca   :  { %v806_v41 = vpop.f32.mrf.mxu2  ;;  %v878_v42 = vpop.f32.mrf.mxu1  ;;  %v958_v14 = vunpack.c.l.bf16 %v957_v12 }
 0x4cc   :  { %v959_v15 = vperm.slane %v958_v14, 0 }
 0x4d2   :  { %v900_v47 = vpop.f32.mrf.mxu2 }
 0x4d3   :  { %v919_v49 = vmul.f32 %v1148_v44, %v900_v47 }
 0x4d5   :  { %v1116_v50 = vpack.i.bf16 %v919_v49, %v918_v48 }
 0x4d7   :  { %1117 = vrot.lane.b32.xlu0 %v1116_v50, %s1398_s15 }
 0x4da   :  { %v902_v51 = vpop.f32.mrf.mxu2 }
 0x520   :  { %v1113_v62 = vpop.permute.xlu2 %1112 }
 0x521   :  { %v1115_v0 = vunpack.i.h.bf16 %v1113_v62  ;;  %v1114_v1 = vunpack.i.l.bf16 %v1113_v62 }
 0x539   :  { %v1108_v57 = vpop.permute.xlu1 %1107 }
 0x53a   :  { %v1110_v59 = vunpack.i.h.bf16 %v1108_v57  ;;  %v1109_v60 = vunpack.i.l.bf16 %v1108_v57 }
 0x53c   :  { %v944_v63 = vsel %vm433_vm8, %v912_v61, %v1109_v60  ;;  %v945_v45 = vsel %vm433_vm8, %v913_v54, %v1110_v59 }
 0x53d   :  { %v947_v7 = vsel %vm946_vm11, %v944_v63, %v1114_v1  ;;  %v948_v8 = vsel %vm946_vm11, %v945_v45, %v1115_v0 }
 0x549   :  { %v1118_v2 = vpop.permute.xlu0 %1117 }
 0x54a   :  { %v1120_v4 = vunpack.i.h.bf16 %v1118_v2  ;;  %v1119_v5 = vunpack.i.l.bf16 %v1118_v2 }
 0x54c   :  { %v950_v10 = vsel %vm949_vm12, %v947_v7, %v1119_v5  ;;  %v951_v11 = vsel %vm949_vm12, %v948_v8, %v1120_v4 }
 0x54d   :  { %v952_v13 = vpack.c.bf16 %v951_v11, %v950_v10 }
 0x54f   :  { %1064 = vmatmul.msk.bf16.vlgmr.msra.gmra.mxu3 %vm180_vm0, %v952_v13 }
 0x5d2   :  { %v984_v16 = vpop.f32.mrf.mxu3 }
 0x5d3   :  { %v985_v17 = vadd.f32 %v984_v16, %v959_v15 }
 0x5d5   :  { %v989_v19 = vpack.c.bf16 %v985_v17, %v985_v17 }
 0x5d7   :  { %992 = vst.msk [vmem:[#allocation16] sm:$0xf] %vm991_vm13, %v989_v19 }
 0x5da   :  { %v986_v20 = vpop.f32.mrf.mxu3 }
 0x5db   :  { %v987_v22 = vadd.f32 %v986_v20, %v959_v15 }
 0x5dd   :  { %v990_v23 = vpack.c.bf16 %v987_v22, %v987_v22 }
 0x5df   :  { %993 = vst.msk [vmem:[#allocation16 + $0x4] sm:$0xf] %vm991_vm13, %v990_v23 }
 0x5e0   :  { %1006 = dma.vmem_to_hbm [thread:$0]  %s999_s17, 128, %s1001_s20, [#allocation4], %s1382_s21, %s1382_s21, %s1383_s22  }
 0x5e1   :  { %1379 = dma.done.wait [#allocation4], 128  }
 0x5e2   :  { %1380 = vsyncadd [#allocation4], 4294967168 }
 0x5e3   :  { %1011 = vsyncpa [#allocation3], 1 }
 0x5e4   :  { %1012 = vsyncpa [#allocation6], 1 }
 0x5e5   :  { %1013 = vsyncpa [#allocation9], 1 }
 0x5e6   :  { %1014 = vsyncpa [#allocation12], 1 }
 0x5e7   :  { %1015 = vsyncpa [#allocation15], 1 }
 0x5e8   :  { %1016 = vsyncpa [#allocation4], 1 }

</bundles_post_ra>
